<compile_context>
chip_gen: v6e
topology: v6e:2x2x1
jax: 0.10.0
libtpu: 0.0.40
codegen_flags: <defaults>
</compile_context>

<pallas_src>
import functools
import math

import jax
import jax.numpy as jnp
from jax.experimental import pallas as pl
from jax.experimental.pallas import tpu as pltpu


def _pad_channels_for_lanes(C, W, lanes=128):
    """Smallest C' >= C such that W*C' is a multiple of `lanes` (full-lane rows)."""
    step = lanes // math.gcd(W, lanes)
    return ((C + step - 1) // step) * step


def _pick_batch_block(N, H, *, target_rows=256, min_rows_per_step=128):
    """Largest divisor Nb of N with Nb*H <= target_rows (fill the MXU M dim);
    then, when the batch allows, back off so the parallel grid has >= 2 steps
    (v7x's two TensorCores) while keeping >= min_rows_per_step rows per step."""
    nb = 1
    for d in range(1, N + 1):
        if N % d == 0 and d * H <= max(target_rows, H):
            nb = d
    if N // nb < 2:
        for d in range(nb - 1, 0, -1):
            if N % d == 0 and N // d >= 2 and d * H >= min_rows_per_step:
                nb = d
                break
    return nb


def _conv2d_same_kernel(x_ref, w_ref, b_ref, o_ref, *, K, Nb, H, WCin, WCout):
    """One batch block.

    x_ref : (Nb, H+K-1, W*Cin)   vertically haloed activations (compute dtype)
    w_ref : (K*W*Cin, W*Cout)    banded weights (kw taps + left/right zero pad
                                 folded in), rows ordered kh-major
    b_ref : (1, W*Cout)          bias broadcast along W, f32
    o_ref : (Nb, H, W*Cout)      output (original dtype)
    """
    # im2col over rows: tap kh is the H-row window starting at row kh of the
    # haloed block (ZeroPad2d's top/bottom rows ARE the halo).  W*Cin is a
    # multiple of 128, so this lane concat is pure aligned vreg assembly.
    taps = [x_ref[:, kh:kh + H, :] for kh in range(K)]
    lhs = jnp.concatenate(taps, axis=-1).reshape(Nb * H, K * WCin)

    # ONE MXU matmul per grid step, contraction depth K*W*Cin, f32 accumulate,
    # bias folded into the epilogue.  Lane-dense (W*Cout) full-lane store.
    acc = jnp.dot(lhs, w_ref[...], preferred_element_type=jnp.float32)
    acc = acc + b_ref[...]
    o_ref[...] = acc.reshape(Nb, H, WCout).astype(o_ref.dtype)


def make_conv2d_same_params(weight, bias, kernel_size, W, *,
                            compute_dtype=jnp.bfloat16):
    """Precompute the banded GEMM operand + bias row ONCE (parameter-prep time).

    weight : (Cout, Cin, K, K)   PyTorch conv weight layout
    bias   : (Cout,)
    Returns:
      w_band   : (K*W*Cin_pad, W*Cout) compute_dtype, rows kh-major, with
                 w_band[kh*W*Cp + wi*Cp + ci, w*Cout + co] = weight[co,ci,kh,kw]
                 where wi = w + kw - ka (zero when the kw tap falls outside the
                 row -> ZeroPad2d's left/right padding costs nothing).
      bias_row : (1, W*Cout) f32
    """
    K = int(kernel_size)
    ka = K // 2
    Cout, Cin = int(weight.shape[0]), int(weight.shape[1])
    cin_p = _pad_channels_for_lanes(Cin, W)
    WCin, WCout = W * cin_p, W * Cout

    w_t = jnp.transpose(weight, (2, 3, 1, 0)).astype(jnp.float32)   # (K,K,Cin,Cout)
    if cin_p != Cin:
        w_t = jnp.pad(w_t, ((0, 0), (0, 0), (0, cin_p - Cin), (0, 0)))
    bands = []
    for kh in range(K):
        b = jnp.zeros((WCin, WCout), jnp.float32)
        for kw in range(K):
            # sel[wi, w] = 1  iff  wi == w + kw - ka  (off-row entries dropped)
            sel = jnp.eye(W, W, k=ka - kw, dtype=jnp.float32)
            b = b + jnp.einsum("uw,io->uiwo", sel, w_t[kh, kw]).reshape(WCin, WCout)
        bands.append(b)
    w_band = jnp.stack(bands).reshape(K * WCin, WCout).astype(compute_dtype)
    bias_row = jnp.tile(bias.astype(jnp.float32), W).reshape(1, WCout)
    return w_band, bias_row


def conv2d_same_nhwc(x_nhwc, w_band, bias_row, kernel_size, *,
                     compute_dtype=jnp.bfloat16):
    """Lane-dense fast path: x (N, H, W, Cin) -> (N, H, W, Cout)."""
    K = int(kernel_size)
    ka = K // 2
    kb = ka - 1 if K % 2 == 0 else ka
    N, H, W, Cin = x_nhwc.shape
    cin_p = _pad_channels_for_lanes(Cin, W)
    WCin = W * cin_p
    WCout = int(w_band.shape[1])
    Cout = WCout // W
    assert w_band.shape[0] == K * WCin, "w_band does not match x shape / kernel_size"
    out_dtype = x_nhwc.dtype
    Hp = H + K - 1                       # ka top + kb bottom halo rows

    Nb = _pick_batch_block(N, H)
    grid = (N // Nb,)

    # ZeroPad2d's top/bottom rows become a vertical halo; Cin is zero-padded so
    # W*Cin is a 128-lane multiple (full-lane loads, aligned in-kernel concat).
    x_p = jnp.pad(x_nhwc.astype(compute_dtype),
                  ((0, 0), (ka, kb), (0, 0), (0, cin_p - Cin)))
    x_flat = x_p.reshape(N, Hp, WCin)
    w_band = w_band.astype(compute_dtype)
    bias_row = bias_row.astype(jnp.float32)

    kernel = functools.partial(_conv2d_same_kernel, K=K, Nb=Nb, H=H,
                               WCin=WCin, WCout=WCout)

    # Scoped-VMEM limit from the actual footprint, capped at 64 MiB (v7x-safe).
    itemsize = jnp.dtype(compute_dtype).itemsize
    out_itemsize = jnp.dtype(out_dtype).itemsize
    footprint = (2 * Nb * Hp * WCin * itemsize         # x blocks (double-buffered)
                 + 2 * K * WCin * WCout * itemsize     # band (double-buffered)
                 + 2 * Nb * H * WCout * out_itemsize   # out blocks
                 + Nb * H * K * WCin * itemsize        # im2col LHS temporary
                 + Nb * H * WCout * 4)                 # f32 accumulator
    vmem_limit = int(min(64 * 1024 * 1024, max(32 * 1024 * 1024, 4 * footprint)))

    out_flat = pl.pallas_call(
        kernel,
        out_shape=jax.ShapeDtypeStruct((N, H, WCout), out_dtype),
        grid_spec=pltpu.PrefetchScalarGridSpec(
            num_scalar_prefetch=0,
            grid=grid,
            in_specs=[
                pl.BlockSpec((Nb, Hp, WCin), lambda n: (n, 0, 0)),
                # Grid-invariant band (constant index_map -> DMA'd once).
                pl.BlockSpec((K * WCin, WCout), lambda n: (0, 0)),
                pl.BlockSpec((1, WCout), lambda n: (0, 0)),
            ],
            out_specs=pl.BlockSpec((Nb, H, WCout), lambda n: (n, 0, 0)),
        ),
        compiler_params=pltpu.CompilerParams(
            dimension_semantics=("parallel",),   # batch blocks across v7x's 2 TCs
            vmem_limit_bytes=vmem_limit,
        ),
    )(x_flat, w_band, bias_row)

    return out_flat.reshape(N, H, W, Cout)


def conv2d_same(x_nchw, w_band, bias_row, kernel_size, *,
                compute_dtype=jnp.bfloat16):
    """PyTorch-parity wrapper: x (N, Cin, H, W) -> (N, Cout, H, W).

    Matches torch Conv2dSame.forward (ZeroPad2d((ka,kb,ka,kb)) + Conv2d(k)).
    Takes the band/bias precomputed once by make_conv2d_same_params.
    """
    x_nhwc = jnp.transpose(x_nchw, (0, 2, 3, 1))
    out_nhwc = conv2d_same_nhwc(x_nhwc, w_band, bias_row, kernel_size,
                                compute_dtype=compute_dtype)
    return jnp.transpose(out_nhwc, (0, 3, 1, 2))


def _reference_conv2d_same(x, weight, bias, K):
    """XLA reference with the torch module's padding, on the same bf16-rounded
    inputs the kernel feeds to the MXU (f32 accumulation)."""
    ka = K // 2
    kb = ka - 1 if K % 2 == 0 else ka
    Cout = weight.shape[0]
    xq = x.astype(jnp.bfloat16).astype(jnp.float32)
    wq = weight.astype(jnp.bfloat16).astype(jnp.float32)
    out = jax.lax.conv_general_dilated(
        xq, wq, window_strides=(1, 1),
        padding=((ka, kb), (ka, kb)),
        dimension_numbers=("NCHW", "OIHW", "NCHW"),
        precision=jax.lax.Precision.HIGHEST)
    return out + bias.reshape(1, Cout, 1, 1)


if __name__ == "__main__":
    def run_case(key, *, N, Cin, Cout, H, W, K):
        kx, kw_key, kb_key = jax.random.split(key, 3)
        x = jax.random.normal(kx, (N, Cin, H, W), dtype=jnp.float32)
        fan_in = Cin * K * K
        bound = 1.0 / (fan_in ** 0.5)
        weight = jax.random.uniform(kw_key, (Cout, Cin, K, K), jnp.float32,
                                    -bound, bound)
        bias = jax.random.uniform(kb_key, (Cout,), jnp.float32, -bound, bound)

        # Parameter prep (band + bias row) happens ONCE, outside the forward.
        w_band, bias_row = make_conv2d_same_params(weight, bias, K, W)
        fwd = jax.jit(conv2d_same, static_argnames=("kernel_size",))
        out = jax.block_until_ready(fwd(x, w_band, bias_row, kernel_size=K))
        assert out.shape == (N, Cout, H, W)

        ref = _reference_conv2d_same(x, weight, bias, K)
        err = float(jnp.max(jnp.abs(out - ref)))
        assert jnp.allclose(out, ref, atol=2e-3, rtol=2e-3), (K, err)

    root = jax.random.PRNGKey(0)
    k_odd, k_even = jax.random.split(root)
    # Odd kernel (the common PoseCNN case) and even kernel (kb = ka - 1).
    run_case(k_odd, N=4, Cin=4, Cout=8, H=16, W=16, K=3)
    run_case(k_even, N=2, Cin=4, Cout=8, H=16, W=16, K=2)
    print("KERNEL_OK")
</pallas_src>

<mosaic_0001>
module attributes {stable_mosaic.version = 11 : i64} {
  func.func @_conv2d_same_kernel(%arg0: i32, %arg1: memref<4x18x128xbf16, #tpu.memory_space<vmem>>, %arg2: memref<384x128xbf16, #tpu.memory_space<vmem>>, %arg3: memref<1x128xf32, #tpu.memory_space<vmem>>, %arg4: memref<4x16x128xf32, #tpu.memory_space<vmem>>) attributes {dimension_semantics = [#tpu.dimension_semantics<parallel>], iteration_bounds = array<i64: 1>, scalar_prefetch = 0 : i64, scratch_operands = 0 : i64, tpu.core_type = #tpu.core_type<tc>, window_params = [{transform_indices = @transform_0, window_bounds = array<i64: 4, 18, 128>}, {pipeline_mode = #tpu.pipeline_mode<synchronous>, transform_indices = @transform_1, window_bounds = array<i64: 384, 128>}, {pipeline_mode = #tpu.pipeline_mode<synchronous>, transform_indices = @transform_2, window_bounds = array<i64: 1, 128>}, {transform_indices = @transform_3, window_bounds = array<i64: 4, 16, 128>}]} {
    %c0 = arith.constant 0 : index
    %c0_0 = arith.constant 0 : index
    %c0_1 = arith.constant 0 : index
    %0 = vector.load %arg1[%c0, %c0_0, %c0_1] : memref<4x18x128xbf16, #tpu.memory_space<vmem>>, vector<4x16x128xbf16>
    %c0_2 = arith.constant 0 : index
    %c1 = arith.constant 1 : index
    %c0_3 = arith.constant 0 : index
    %1 = vector.load %arg1[%c0_2, %c1, %c0_3] : memref<4x18x128xbf16, #tpu.memory_space<vmem>>, vector<4x16x128xbf16>
    %c0_4 = arith.constant 0 : index
    %c2 = arith.constant 2 : index
    %c0_5 = arith.constant 0 : index
    %2 = vector.load %arg1[%c0_4, %c2, %c0_5] : memref<4x18x128xbf16, #tpu.memory_space<vmem>>, vector<4x16x128xbf16>
    %3 = tpu.concatenate %0, %1, %2 in 2 : vector<4x16x128xbf16>, vector<4x16x128xbf16>, vector<4x16x128xbf16> -> vector<4x16x384xbf16>
    %4 = vector.shape_cast %3 : vector<4x16x384xbf16> to vector<64x384xbf16>
    %c0_6 = arith.constant 0 : index
    %c0_7 = arith.constant 0 : index
    %5 = vector.load %arg2[%c0_6, %c0_7] : memref<384x128xbf16, #tpu.memory_space<vmem>>, vector<384x128xbf16>
    %cst = arith.constant dense<0.000000e+00> : vector<64x128xf32>
    %6 = tpu.matmul %4, %5, %cst {dimension_numbers = #tpu.dot_dimension_numbers<[1], [0], [0], [1], [0, 0, 1, 1], [], []>} : vector<64x384xbf16>, vector<384x128xbf16>, vector<64x128xf32> -> vector<64x128xf32>
    %c0_8 = arith.constant 0 : index
    %c0_9 = arith.constant 0 : index
    %7 = vector.load %arg3[%c0_8, %c0_9] : memref<1x128xf32, #tpu.memory_space<vmem>>, vector<1x128xf32>
    %8 = vector.broadcast %7 : vector<1x128xf32> to vector<64x128xf32>
    %9 = arith.addf %6, %8 : vector<64x128xf32>
    %10 = vector.shape_cast %9 : vector<64x128xf32> to vector<4x16x128xf32>
    %c0_10 = arith.constant 0 : index
    %c0_11 = arith.constant 0 : index
    %c0_12 = arith.constant 0 : index
    %11 = vector.load %arg4[%c0_10, %c0_11, %c0_12] : memref<4x16x128xf32, #tpu.memory_space<vmem>>, vector<4x16x128xf32>
    tpu.vector_store %arg4[%c0_10, %c0_11, %c0_12], %10 {strides = array<i32>} : memref<4x16x128xf32, #tpu.memory_space<vmem>>, vector<4x16x128xf32>,
    return
  }
  func.func @transform_0(%arg0: i32) -> (i32, i32, i32) {
    %c0_i32 = arith.constant 0 : i32
    %c0_i32_0 = arith.constant 0 : i32
    %c0_i32_1 = arith.constant 0 : i32
    return %arg0, %c0_i32, %c0_i32_0 : i32, i32, i32
  }
  func.func @transform_1(%arg0: i32) -> (i32, i32) {
    %c0_i32 = arith.constant 0 : i32
    %c0_i32_0 = arith.constant 0 : i32
    %c0_i32_1 = arith.constant 0 : i32
    return %c0_i32, %c0_i32_0 : i32, i32
  }
  func.func @transform_2(%arg0: i32) -> (i32, i32) {
    %c0_i32 = arith.constant 0 : i32
    %c0_i32_0 = arith.constant 0 : i32
    %c0_i32_1 = arith.constant 0 : i32
    return %c0_i32, %c0_i32_0 : i32, i32
  }
  func.func @transform_3(%arg0: i32) -> (i32, i32, i32) {
    %c0_i32 = arith.constant 0 : i32
    %c0_i32_0 = arith.constant 0 : i32
    %c0_i32_1 = arith.constant 0 : i32
    return %arg0, %c0_i32, %c0_i32_0 : i32, i32, i32
  }
}

</mosaic_0001>

<bundles_post_ra>
// kernel: conv2d_same.1
= control target key start
LH: loop header
LB: loop body
LE: loop exit
PB: predicated region body
PF: predicated region fallthrough
CT: control target
= control target key end

     0   :  { %vm67_vm0 = vsmask.f32 7424  ;;  %vm132_vm1 = vcmask 1046528   ;;  %s814_s1 = inlined_call_operand.vmem [shape: bf16[384,128], index: 1, kind: input, shape index: {}]   ;;  %s815_s0 = inlined_call_operand.vmem [shape: bf16[4,18,128], index: 0, kind: input, shape index: {}]   ;;  %s816_s2 = inlined_call_operand.vmem [shape: f32[1,128], index: 2, kind: input, shape index: {}]   ;;  %s817_s3 = inlined_call_operand.vmem [shape: f32[4,16,128], index: 3, kind: output, shape index: {}]  }
   0x1   :  { %v603_v0 = vld [vmem:[%s814_s1 + $0x78] sm:$0xff]   ;;  %v605_v2 = vld [vmem:[%s814_s1 + $0x70] sm:$0xff]   ;;  %v608_v5 = vld [vmem:[%s814_s1 + $0x68] sm:$0xff]  }
   0x2   :  { %v604_v1 = vld [vmem:[%s814_s1 + $0x38] sm:$0xff]   ;;  %527 = vmatprep.subr.bf16.mxu0 %v603_v0  ;;  %v607_v4 = vld [vmem:[%s814_s1 + $0x30] sm:$0xff]   ;;  %v610_v7 = vld [vmem:[%s814_s1 + $0x28] sm:$0xff]  }
   0x3   :  { %528 = vmatpush3.bf16.msra.mxu0 %v604_v1  ;;  %v606_v3 = vld [vmem:[%s814_s1 + $0xb8] sm:$0xff]   ;;  %v609_v6 = vld [vmem:[%s814_s1 + $0xb0] sm:$0xff]   ;;  %v611_v8 = vld [vmem:[%s814_s1 + $0x60] sm:$0xff]  }
   0x4   :  { %529 = vmatprep.subr.bf16.mxu0 %v605_v2  ;;  %579 = vmatprep.subr.bf16.mxu1 %v606_v3  ;;  %v612_v9 = vld [vmem:[%s814_s1 + $0xa8] sm:$0xff]   ;;  %v613_v10 = vld [vmem:[%s814_s1 + $0x20] sm:$0xff]   ;;  %v614_v11 = vld [vmem:[%s814_s1 + $0x58] sm:$0xff]  }
   0x5   :  { %580 = vmatpush3.bf16.msra.mxu1 %v606_v3  ;;  %v615_v12 = vld [vmem:[%s814_s1 + $0xa0] sm:$0xff]   ;;  %v616_v13 = vld [vmem:[%s814_s1 + $0x18] sm:$0xff]   ;;  %v617_v15 = vld [vmem:[%s814_s1 + $0x50] sm:$0xff]  }
   0x6   :  { %581 = vmatprep.subr.bf16.mxu1 %v609_v6  ;;  %v618_v14 = vld [vmem:[%s814_s1 + $0x98] sm:$0xff]   ;;  %v619_v16 = vld [vmem:[%s814_s1 + $0x10] sm:$0xff]   ;;  %v620_v18 = vld [vmem:[%s814_s1 + $0x48] sm:$0xff]  }
   0x7   :  { %530 = vmatpush3.bf16.msra.mxu0 %v607_v4  ;;  %v621_v17 = vld [vmem:[%s814_s1 + $0x90] sm:$0xff]   ;;  %v622_v19 = vld [vmem:[%s814_s1 + $0x8] sm:$0xff]   ;;  %v15_v21 = vld [vmem:[%s815_s0] sm:$0xf] }
   0x8   :  { %531 = vmatprep.subr.bf16.mxu0 %v608_v5  ;;  %v624_v20 = vld [vmem:[%s814_s1 + $0x88] sm:$0xff]   ;;  %v16_v22 = vld [vmem:[%s815_s0 + $0x4] sm:$0xf]  ;;  %v27_v26 = vld [vmem:[%s815_s0] sm:$0xe] }
   0x9   :  { %582 = vmatpush3.bf16.msra.mxu1 %v609_v6  ;;  %v623_v23 = vld [vmem:[%s814_s1 + $0x40] sm:$0xff]   ;;  %v490_v24 = vcombine.low %v15_v21, %v16_v22  ;;  %v627_v25 = vld [vmem:[%s815_s0 + $0x8] ss:$0 sps:$4 sm:$0x11]   ;;  %v17_v27 = vld [vmem:[%s815_s0 + $0xc] sm:$0xf]  ;;  %v498_v32 = vcombine.low %v27_v26, %v16_v22 }
   0xa   :  { %583 = vmatprep.subr.bf16.mxu1 %v612_v9  ;;  %v625_v28 = vld [vmem:[%s814_s1] sm:$0xff]   ;;  %v76_v31 = vshll.u32 %v627_v25, 16  ;;  %v18_v33 = vld [vmem:[%s815_s0 + $0x10] sm:$0xf]  ;;  %v134_v35 = vrot.slane %v627_v25, 1 }
   0xb   :  { %532 = vmatpush3.bf16.msra.mxu0 %v610_v7  ;;  %v69_v29 = vshrl.u32 %v490_v24, 16  ;;  %v71_v30 = vshll.u32 %v490_v24, 16  ;;  %v628_v34 = vld [vmem:[%s814_s1 + $0x80] sm:$0xff]   ;;  %v28_v36 = vld [vmem:[%s815_s0 + $0xc] sm:$0xe]  ;;  %v491_v37 = vcombine.low %v17_v27, %v18_v33  ;;  %v133_v40 = vrot.slane %v498_v32, 1 }
   0xc   :  { %533 = vmatprep.subr.bf16.mxu0 %v611_v8  ;;  %v78_v39 = vrot.slane %v76_v31, 1  ;;  %v631_v41 = vld [vmem:[%s815_s0 + $0x14] ss:$0 sps:$4 sm:$0x11]   ;;  %v499_v42 = vcombine.low %v28_v36, %v18_v33  ;;  %v19_v45 = vld [vmem:[%s815_s0 + $0x18] sm:$0xf] }
   0xd   :  { %584 = vmatpush3.bf16.msra.mxu1 %v612_v9  ;;  %v73_v38 = vrot.slane %v71_v30, 1  ;;  %v81_v43 = vshrl.u32 %v491_v37, 16  ;;  %v83_v44 = vshll.u32 %v491_v37, 16  ;;  %v20_v46 = vld [vmem:[%s815_s0 + $0x1c] sm:$0xf]  ;;  %v135_v48 = vsel %vm132_vm1, %v133_v40, %v134_v35 }
   0xe   :  { %585 = vmatprep.subr.bf16.mxu1 %v615_v12  ;;  %v136_v49 = vrot.slane %v499_v42, 1  ;;  %v137_v50 = vrot.slane %v631_v41, 1  ;;  %v29_v51 = vld [vmem:[%s815_s0 + $0x18] sm:$0xe]  ;;  %v88_v53 = vshll.u32 %v631_v41, 16  ;;  %v492_v54 = vcombine.low %v19_v45, %v20_v46  ;;  %595 = vmatprep.mubr.bf16.mxu1 %v135_v48 }
   0xf   :  { %534 = vmatpush3.bf16.msra.mxu0 %v613_v10  ;;  %v74_v47 = vor.u32 %v73_v38, %v69_v29  ;;  %v85_v52 = vrot.slane %v83_v44, 1  ;;  %v634_v55 = vld [vmem:[%s815_s0 + $0x20] ss:$0 sps:$4 sm:$0x11]   ;;  %v500_v56 = vcombine.low %v29_v51, %v20_v46  ;;  %v21_v59 = vld [vmem:[%s815_s0 + $0x24] sm:$0xf] }
  0x10   :  { %535 = vmatprep.subr.bf16.mxu0 %v614_v11  ;;  %v138_v58 = vsel %vm132_vm1, %v136_v49, %v137_v50  ;;  %v22_v60 = vld [vmem:[%s815_s0 + $0x28] sm:$0xf]  ;;  %v90_v62 = vrot.slane %v88_v53, 1  ;;  %v93_v63 = vshrl.u32 %v492_v54, 16  ;;  %v95_v0 = vshll.u32 %v492_v54, 16 }
  0x11   :  { %586 = vmatpush3.bf16.msra.mxu1 %v615_v12  ;;  %v79_v57 = vsel %vm67_vm0, %v74_v47, %v78_v39  ;;  %v86_v61 = vor.u32 %v85_v52, %v81_v43  ;;  %v30_v1 = vld [vmem:[%s815_s0 + $0x24] sm:$0xe]  ;;  %v100_v2 = vshll.u32 %v634_v55, 16  ;;  %v139_v3 = vrot.slane %v500_v56, 1  ;;  %v502_v26 = vld [vmem:[%s816_s2] ss:$0 sm:$0xff] }
  0x12   :  { %587 = vmatprep.subr.bf16.mxu1 %v618_v14  ;;  %380 = vmatprep.mubr.bf16.mxu0 %v79_v57  ;;  %v140_v4 = vrot.slane %v634_v55, 1  ;;  %v493_v5 = vcombine.low %v21_v59, %v22_v60  ;;  %v637_v6 = vld [vmem:[%s815_s0 + $0x2c] ss:$0 sps:$4 sm:$0x11]   ;;  %v97_v8 = vrot.slane %v95_v0, 1  ;;  %v501_v9 = vcombine.low %v30_v1, %v22_v60 }
  0x13   :  { %536 = vmatpush3.bf16.msra.mxu0 %v616_v13  ;;  %v91_v7 = vsel %vm67_vm0, %v86_v61, %v90_v62  ;;  %v102_v10 = vrot.slane %v100_v2, 1 }
  0x14   :  { %537 = vmatprep.subr.bf16.mxu0 %v617_v15  ;;  %v141_v11 = vsel %vm132_vm1, %v139_v3, %v140_v4  ;;  %v98_v12 = vor.u32 %v97_v8, %v93_v63  ;;  %v107_v13 = vshll.u32 %v493_v5, 16  ;;  %v143_v15 = vrot.slane %v637_v6, 1 }
  0x15   :  { %588 = vmatpush3.bf16.msra.mxu1 %v618_v14  ;;  %v142_v14 = vrot.slane %v501_v9, 1 }
  0x16   :  { %589 = vmatprep.subr.bf16.mxu1 %v621_v17 }
  0x17   :  { %538 = vmatpush3.bf16.msra.mxu0 %v619_v16  ;;  %v103_v16 = vsel %vm67_vm0, %v98_v12, %v102_v10 }
  0x18   :  { %539 = vmatprep.subr.bf16.mxu0 %v620_v18  ;;  %v109_v18 = vrot.slane %v107_v13, 1 }
  0x19   :  { %590 = vmatpush3.bf16.msra.mxu1 %v621_v17  ;;  %v105_v17 = vshrl.u32 %v493_v5, 16 }
  0x1a   :  { %591 = vmatprep.subr.bf16.mxu1 %v624_v20 }
  0x1b   :  { %540 = vmatpush3.bf16.msra.mxu0 %v622_v19  ;;  %v112_v19 = vshll.u32 %v637_v6, 16  ;;  %v110_v21 = vor.u32 %v109_v18, %v105_v17 }
  0x1c   :  { %541 = vmatprep.subr.bf16.mxu0 %v623_v23 }
  0x1d   :  { %592 = vmatpush3.bf16.msra.mxu1 %v624_v20  ;;  %v144_v20 = vsel %vm132_vm1, %v142_v14, %v143_v15  ;;  %v114_v22 = vrot.slane %v112_v19, 1 }
  0x1e   :  { %593 = vmatprep.subr.bf16.mxu1 %v628_v34 }
  0x1f   :  { %542 = vmatpush3.bf16.msra.mxu0 %v625_v28  ;;  %v115_v23 = vsel %vm67_vm0, %v110_v21, %v114_v22 }
  0x21   :  { %594 = vmatpush3.bf16.msra.mxu1 %v628_v34 }
  0x22   :  { %381 = vmatmul.mubr.bf16.vlgmr.msra.gmra.mxu0 %v490_v24 }
  0x23   :  { %388 = vmatprep.mubr.bf16.mxu0 %v91_v7 }
  0x24   :  { %596 = vmatmul.mubr.bf16.vlgmr.msra.gmra.mxu1 %v138_v58 }
  0x25   :  { %599 = vmatprep.mubr.bf16.mxu1 %v141_v11 }
  0x2a   :  { %389 = vmatmul.mubr.bf16.gmra.mxu0 %v491_v37 }
  0x2b   :  { %396 = vmatprep.mubr.bf16.mxu0 %v103_v16 }
  0x2c   :  { %600 = vmatmul.mubr.bf16.gmra.mxu1 %v144_v20 }
  0x32   :  { %397 = vmatmul.mubr.bf16.gmra.mxu0 %v492_v54 }
  0x33   :  { %404 = vmatprep.mubr.bf16.mxu0 %v115_v23 }
  0x3a   :  { %405 = vmatmul.mubr.bf16.gmra.mxu0 %v493_v5 }
  0xe2   :  { %v543_v24 = vpop.f32.mrf.mxu0 }
  0xe4   :  { %v544_v25 = vpop.f32.mrf.mxu0  ;;  %v597_v28 = vpop.f32.mrf.mxu1 }
  0xe5   :  { %v545_v27 = vadd.f32 %v544_v25, %v543_v24 }
  0xe6   :  { %v546_v29 = vpop.f32.mrf.mxu0  ;;  %v447_v31 = vpop.f32.mrf.mxu1 }
  0xe7   :  { %v383_v30 = vadd.f32 %v545_v27, %v502_v26 }
  0xe8   :  { %v547_v32 = vpop.f32.mrf.mxu0  ;;  %v598_v35 = vpop.f32.mrf.mxu1 }
  0xe9   :  { %v548_v33 = vadd.f32 %v547_v32, %v546_v29  ;;  %v448_v34 = vadd.f32 %v447_v31, %v383_v30 }
  0xea   :  { %v549_v36 = vpop.f32.mrf.mxu0  ;;  %v450_v38 = vpop.f32.mrf.mxu1 }
  0xeb   :  { %478 = vst [vmem:[%s817_s3] sm:$0xff] %v448_v34  ;;  %v386_v37 = vadd.f32 %v548_v33, %v502_v26 }
  0xec   :  { %v550_v39 = vpop.f32.mrf.mxu0  ;;  %v601_v43 = vpop.f32.mrf.mxu1 }
  0xed   :  { %v551_v40 = vadd.f32 %v550_v39, %v549_v36  ;;  %v451_v41 = vadd.f32 %v450_v38, %v386_v37 }
  0xee   :  { %v552_v42 = vpop.f32.mrf.mxu0  ;;  %v463_v49 = vpop.f32.mrf.mxu1 }
  0xef   :  { %v391_v44 = vadd.f32 %v551_v40, %v502_v26  ;;  %479 = vst [vmem:[%s817_s3 + $0x8] sm:$0xff] %v451_v41 }
  0xf0   :  { %v553_v45 = vpop.f32.mrf.mxu0  ;;  %v602_v55 = vpop.f32.mrf.mxu1 }
  0xf1   :  { %v456_v46 = vadd.f32 %v597_v28, %v391_v44  ;;  %v554_v47 = vadd.f32 %v553_v45, %v552_v42 }
  0xf2   :  { %v555_v48 = vpop.f32.mrf.mxu0  ;;  %v466_v61 = vpop.f32.mrf.mxu1 }
  0xf3   :  { %480 = vst [vmem:[%s817_s3 + $0x10] sm:$0xff] %v456_v46  ;;  %v394_v50 = vadd.f32 %v554_v47, %v502_v26 }
  0xf4   :  { %v556_v51 = vpop.f32.mrf.mxu0 }
  0xf5   :  { %v459_v52 = vadd.f32 %v598_v35, %v394_v50  ;;  %v557_v53 = vadd.f32 %v556_v51, %v555_v48 }
  0xf6   :  { %v558_v54 = vpop.f32.mrf.mxu0 }
  0xf7   :  { %481 = vst [vmem:[%s817_s3 + $0x18] sm:$0xff] %v459_v52  ;;  %v399_v56 = vadd.f32 %v557_v53, %v502_v26 }
  0xf8   :  { %v559_v57 = vpop.f32.mrf.mxu0 }
  0xf9   :  { %v560_v58 = vadd.f32 %v559_v57, %v558_v54  ;;  %v464_v59 = vadd.f32 %v463_v49, %v399_v56 }
  0xfa   :  { %v561_v60 = vpop.f32.mrf.mxu0 }
  0xfb   :  { %482 = vst [vmem:[%s817_s3 + $0x20] sm:$0xff] %v464_v59  ;;  %v402_v62 = vadd.f32 %v560_v58, %v502_v26 }
  0xfc   :  { %v562_v63 = vpop.f32.mrf.mxu0 }
  0xfd   :  { %v563_v0 = vadd.f32 %v562_v63, %v561_v60  ;;  %v467_v1 = vadd.f32 %v466_v61, %v402_v62 }
  0xfe   :  { %v564_v2 = vpop.f32.mrf.mxu0 }
  0xff   :  { %v407_v3 = vadd.f32 %v563_v0, %v502_v26  ;;  %483 = vst [vmem:[%s817_s3 + $0x28] sm:$0xff] %v467_v1 }
 0x100   :  { %v565_v4 = vpop.f32.mrf.mxu0 }
 0x101   :  { %v472_v5 = vadd.f32 %v601_v43, %v407_v3  ;;  %v566_v6 = vadd.f32 %v565_v4, %v564_v2 }
 0x103   :  { %484 = vst [vmem:[%s817_s3 + $0x30] sm:$0xff] %v472_v5  ;;  %v410_v7 = vadd.f32 %v566_v6, %v502_v26 }
 0x105   :  { %v475_v8 = vadd.f32 %v602_v55, %v410_v7 }
 0x107   :  { %485 = vst [vmem:[%s817_s3 + $0x38] sm:$0xff] %v475_v8 }

</bundles_post_ra>
